<compile_context>
chip_gen: v5e
topology: v5e:2x2
jax: 0.10.0
libtpu: 0.0.40
codegen_flags: <defaults>
</compile_context>

<pallas_src>
import math

import jax
import jax.numpy as jnp
from jax.experimental import pallas as pl
from jax.experimental.pallas import tpu as pltpu


def _round_up(n, m):
    return ((n + m - 1) // m) * m


def _choose_tile_b(B, tile_b_max):
    """Pick (tile_b, num_tiles).

    tile_b is a multiple of 128 (lane-dense output stores, (8,128) BlockSpec
    rule), tail padding is minimized, and we aim for >= 4 grid steps (so v7x's
    second TensorCore gets work) whenever tiles can stay >= ~1024 rows to keep
    the ~0.35 us per-grid-step overhead amortized.
    """
    B = max(int(B), 1)
    cap = max(128, min(_round_up(B, 128), _round_up(int(tile_b_max), 128)))
    num_tiles = pl.cdiv(B, cap)
    while num_tiles < 4 and pl.cdiv(B, num_tiles + 1) >= 1024:
        num_tiles += 1
    tile_b = _round_up(pl.cdiv(B, num_tiles), 128)
    num_tiles = pl.cdiv(B, tile_b)
    return tile_b, num_tiles


def value_net_kernel(xT_ref, w1_ref, b1_ref, w2_ref, b2_ref, w3_ref, b3_ref,
                     out_ref):
    # fc1 + ReLU: (hidden, state_dim) @ (state_dim, TILE_B) -> batch on lanes.
    # bf16 MXU inputs, f32 accumulation, f32 epilogue (v5e-safe).
    h1 = jnp.dot(w1_ref[...], xT_ref[...], preferred_element_type=jnp.float32)
    h1 = jnp.maximum(h1 + b1_ref[...], 0.0)                 # (hidden, TILE_B)
    # fc2 + ReLU
    h2 = jnp.dot(w2_ref[...], h1.astype(jnp.bfloat16),
                 preferred_element_type=jnp.float32)
    h2 = jnp.maximum(h2 + b2_ref[...], 0.0)                 # (hidden, TILE_B)
    # fc_out (out_features=1): weighted sublane reduce; result is already the
    # lane-dense (1, TILE_B) output block.
    v = jnp.sum(h2 * w3_ref[...], axis=0, keepdims=True)    # (1, TILE_B)
    out_ref[...] = (v + b3_ref[...]).astype(out_ref.dtype)


def value_network(x, params, *, tile_b_max=8192):
    """Forward pass of ValueNetwork. x: (B, state_dim) float32 -> (B, 1)."""
    w1, b1, w2, b2, w3, b3 = params          # PyTorch-native: W (out, in), b (out,)
    B, state_dim = x.shape
    hidden = w1.shape[0]

    tile_b, num_tiles = _choose_tile_b(B, tile_b_max)
    padded_B = num_tiles * tile_b

    # Batch-on-lanes input: transpose + bf16 cast + pad fuse into one tiny XLA
    # op on a (B, state_dim) array; the kernel sees lane-dense (state_dim,
    # TILE_B) blocks whose DMAs are `state_dim` contiguous rows.
    xT = jnp.pad(x.T.astype(jnp.bfloat16), ((0, 0), (0, padded_B - B)))

    # Weight prep (tiny; pre-pack once outside the step loop in real use).
    # MXU operands in bf16; epilogue operands in f32, shaped (hidden, 1) so
    # they broadcast across the lane (batch) axis.
    w1b = w1.astype(jnp.bfloat16)                       # (hidden, state_dim)
    w2b = w2.astype(jnp.bfloat16)                       # (hidden, hidden)
    b1c = b1.reshape(hidden, 1).astype(jnp.float32)
    b2c = b2.reshape(hidden, 1).astype(jnp.float32)
    w3c = w3.reshape(hidden, 1).astype(jnp.float32)     # fc_out weight
    b3c = b3.reshape(1, 1).astype(jnp.float32)

    def resident(arr):
        # Grid-invariant block (same tile every step): single pipeline buffer.
        return pl.BlockSpec(arr.shape, lambda i: (0,) * arr.ndim,
                            pipeline_mode=pl.Buffered(1))

    out = pl.pallas_call(
        value_net_kernel,
        out_shape=jax.ShapeDtypeStruct((1, padded_B), jnp.float32),
        grid=(num_tiles,),
        in_specs=[
            pl.BlockSpec((state_dim, tile_b), lambda i: (0, i)),
            resident(w1b), resident(b1c),
            resident(w2b), resident(b2c),
            resident(w3c), resident(b3c),
        ],
        out_specs=pl.BlockSpec((1, tile_b), lambda i: (0, i)),
        compiler_params=pltpu.CompilerParams(
            dimension_semantics=("parallel",)),
    )(xT, w1b, b1c, w2b, b2c, w3c, b3c)

    return out[0, :B].reshape(B, 1)


def init_params(key, state_dim, hidden_dim):
    """nn.Linear default init: U(-1/sqrt(fan_in), .); PyTorch-native layouts."""
    ks = jax.random.split(key, 6)

    def lin(kw, kb, fan_in, fan_out):
        bound = 1.0 / math.sqrt(fan_in)
        w = jax.random.uniform(kw, (fan_out, fan_in), jnp.float32, -bound, bound)
        b = jax.random.uniform(kb, (fan_out,), jnp.float32, -bound, bound)
        return w, b

    w1, b1 = lin(ks[0], ks[1], state_dim, hidden_dim)
    w2, b2 = lin(ks[2], ks[3], hidden_dim, hidden_dim)
    w3, b3 = lin(ks[4], ks[5], hidden_dim, 1)
    return (w1, b1, w2, b2, w3, b3)


def value_network_ref(x, params):
    """Reference matching kernel numerics (bf16 MXU inputs, f32 accumulation)."""
    w1, b1, w2, b2, w3, b3 = params

    def mm(a, w):
        return jnp.dot(a.astype(jnp.bfloat16), w.T.astype(jnp.bfloat16),
                       preferred_element_type=jnp.float32)

    h1 = jnp.maximum(mm(x, w1) + b1, 0.0)
    h2 = jnp.maximum(mm(h1, w2) + b2, 0.0)
    return jnp.sum(h2 * w3.reshape(1, -1), axis=-1, keepdims=True) + b3.reshape(1, 1)


def value_network_ref_f32(x, params):
    """Pure-f32 reference (original PyTorch module semantics)."""
    w1, b1, w2, b2, w3, b3 = params
    h1 = jnp.maximum(x @ w1.T + b1, 0.0)
    h2 = jnp.maximum(h1 @ w2.T + b2, 0.0)
    return h2 @ w3.T + b3


if __name__ == "__main__":
    state_dim = 4
    hidden_dim = 32

    key = jax.random.PRNGKey(0)
    k_x, k_p, k_x2 = jax.random.split(key, 3)
    params = init_params(k_p, state_dim, hidden_dim)

    # Small batch (single 128-wide tile).
    batch = 8
    x = jax.random.normal(k_x, (batch, state_dim), dtype=jnp.float32)
    out = jax.block_until_ready(value_network(x, params))
    assert out.shape == (batch, 1), out.shape
    ref = value_network_ref(x, params)
    assert jnp.allclose(out, ref, atol=1e-4, rtol=1e-4), (out, ref)
    ref32 = value_network_ref_f32(x, params)
    assert jnp.allclose(out, ref32, atol=5e-2, rtol=5e-2), (out, ref32)

    # Multi-tile path with a ragged tail (padding + multiple grid steps).
    batch2 = 300
    x2 = jax.random.normal(k_x2, (batch2, state_dim), dtype=jnp.float32)
    out2 = jax.block_until_ready(value_network(x2, params, tile_b_max=128))
    assert out2.shape == (batch2, 1), out2.shape
    ref2 = value_network_ref(x2, params)
    assert jnp.allclose(out2, ref2, atol=1e-4, rtol=1e-4)

    print("KERNEL_OK")
</pallas_src>

<mosaic_0001>
module attributes {stable_mosaic.version = 11 : i64} {
  func.func @value_net_kernel(%arg0: i32, %arg1: memref<4x128xbf16, #tpu.memory_space<vmem>>, %arg2: memref<32x4xbf16, #tpu.memory_space<vmem>>, %arg3: memref<32x1xf32, #tpu.memory_space<vmem>>, %arg4: memref<32x32xbf16, #tpu.memory_space<vmem>>, %arg5: memref<32x1xf32, #tpu.memory_space<vmem>>, %arg6: memref<32x1xf32, #tpu.memory_space<vmem>>, %arg7: memref<1x1xf32, #tpu.memory_space<vmem>>, %arg8: memref<1x128xf32, #tpu.memory_space<vmem>>) attributes {dimension_semantics = [#tpu.dimension_semantics<parallel>], iteration_bounds = array<i64: 1>, scalar_prefetch = 0 : i64, scratch_operands = 0 : i64, tpu.core_type = #tpu.core_type<tc>, window_params = [{transform_indices = @transform_0, window_bounds = array<i64: 4, 128>}, {pipeline_mode = #tpu.pipeline_mode<synchronous>, transform_indices = @transform_1, window_bounds = array<i64: 32, 4>}, {pipeline_mode = #tpu.pipeline_mode<synchronous>, transform_indices = @transform_2, window_bounds = array<i64: 32, 1>}, {pipeline_mode = #tpu.pipeline_mode<synchronous>, transform_indices = @transform_3, window_bounds = array<i64: 32, 32>}, {pipeline_mode = #tpu.pipeline_mode<synchronous>, transform_indices = @transform_4, window_bounds = array<i64: 32, 1>}, {pipeline_mode = #tpu.pipeline_mode<synchronous>, transform_indices = @transform_5, window_bounds = array<i64: 32, 1>}, {pipeline_mode = #tpu.pipeline_mode<synchronous>, transform_indices = @transform_6, window_bounds = array<i64: 1, 1>}, {transform_indices = @transform_7, window_bounds = array<i64: 1, 128>}]} {
    %c0 = arith.constant 0 : index
    %c0_0 = arith.constant 0 : index
    %0 = vector.load %arg2[%c0, %c0_0] : memref<32x4xbf16, #tpu.memory_space<vmem>>, vector<32x4xbf16>
    %c0_1 = arith.constant 0 : index
    %c0_2 = arith.constant 0 : index
    %1 = vector.load %arg1[%c0_1, %c0_2] : memref<4x128xbf16, #tpu.memory_space<vmem>>, vector<4x128xbf16>
    %cst = arith.constant dense<0.000000e+00> : vector<32x128xf32>
    %2 = tpu.matmul %0, %1, %cst {dimension_numbers = #tpu.dot_dimension_numbers<[1], [0], [0], [1], [0, 0, 1, 1], [], []>} : vector<32x4xbf16>, vector<4x128xbf16>, vector<32x128xf32> -> vector<32x128xf32>
    %c0_3 = arith.constant 0 : index
    %c0_4 = arith.constant 0 : index
    %3 = vector.load %arg3[%c0_3, %c0_4] : memref<32x1xf32, #tpu.memory_space<vmem>>, vector<32x1xf32>
    %4 = vector.broadcast %3 : vector<32x1xf32> to vector<32x128xf32>
    %5 = arith.addf %2, %4 : vector<32x128xf32>
    %cst_5 = arith.constant 0.000000e+00 : f32
    %6 = vector.broadcast %cst_5 : f32 to vector<32x128xf32>
    %7 = arith.maximumf %5, %6 : vector<32x128xf32>
    %c0_6 = arith.constant 0 : index
    %c0_7 = arith.constant 0 : index
    %8 = vector.load %arg4[%c0_6, %c0_7] : memref<32x32xbf16, #tpu.memory_space<vmem>>, vector<32x32xbf16>
    %9 = arith.truncf %7 : vector<32x128xf32> to vector<32x128xbf16>
    %cst_8 = arith.constant dense<0.000000e+00> : vector<32x128xf32>
    %10 = tpu.matmul %8, %9, %cst_8 {dimension_numbers = #tpu.dot_dimension_numbers<[1], [0], [0], [1], [0, 0, 1, 1], [], []>} : vector<32x32xbf16>, vector<32x128xbf16>, vector<32x128xf32> -> vector<32x128xf32>
    %c0_9 = arith.constant 0 : index
    %c0_10 = arith.constant 0 : index
    %11 = vector.load %arg5[%c0_9, %c0_10] : memref<32x1xf32, #tpu.memory_space<vmem>>, vector<32x1xf32>
    %12 = vector.broadcast %11 : vector<32x1xf32> to vector<32x128xf32>
    %13 = arith.addf %10, %12 : vector<32x128xf32>
    %cst_11 = arith.constant 0.000000e+00 : f32
    %14 = vector.broadcast %cst_11 : f32 to vector<32x128xf32>
    %15 = arith.maximumf %13, %14 : vector<32x128xf32>
    %c0_12 = arith.constant 0 : index
    %c0_13 = arith.constant 0 : index
    %16 = vector.load %arg6[%c0_12, %c0_13] : memref<32x1xf32, #tpu.memory_space<vmem>>, vector<32x1xf32>
    %17 = vector.broadcast %16 : vector<32x1xf32> to vector<32x128xf32>
    %18 = arith.mulf %15, %17 : vector<32x128xf32>
    %cst_14 = arith.constant dense<0.000000e+00> : vector<128xf32>
    %19 = vector.multi_reduction <add>, %18, %cst_14 [0] : vector<32x128xf32> to vector<128xf32>
    %20 = vector.shape_cast %19 : vector<128xf32> to vector<1x128xf32>
    %c0_15 = arith.constant 0 : index
    %c0_16 = arith.constant 0 : index
    %21 = vector.load %arg7[%c0_15, %c0_16] : memref<1x1xf32, #tpu.memory_space<vmem>>, vector<1x1xf32>
    %22 = vector.broadcast %21 : vector<1x1xf32> to vector<1x128xf32>
    %23 = arith.addf %20, %22 : vector<1x128xf32>
    %c0_17 = arith.constant 0 : index
    %c0_18 = arith.constant 0 : index
    %24 = vector.load %arg8[%c0_17, %c0_18] : memref<1x128xf32, #tpu.memory_space<vmem>>, vector<1x128xf32>
    tpu.vector_store %arg8[%c0_17, %c0_18], %23 {strides = array<i32>} : memref<1x128xf32, #tpu.memory_space<vmem>>, vector<1x128xf32>,
    return
  }
  func.func @transform_0(%arg0: i32) -> (i32, i32) {
    %c0_i32 = arith.constant 0 : i32
    %c0_i32_0 = arith.constant 0 : i32
    return %c0_i32, %arg0 : i32, i32
  }
  func.func @transform_1(%arg0: i32) -> (i32, i32) {
    %c0_i32 = arith.constant 0 : i32
    %c0_i32_0 = arith.constant 0 : i32
    %c0_i32_1 = arith.constant 0 : i32
    return %c0_i32, %c0_i32_0 : i32, i32
  }
  func.func @transform_2(%arg0: i32) -> (i32, i32) {
    %c0_i32 = arith.constant 0 : i32
    %c0_i32_0 = arith.constant 0 : i32
    %c0_i32_1 = arith.constant 0 : i32
    return %c0_i32, %c0_i32_0 : i32, i32
  }
  func.func @transform_3(%arg0: i32) -> (i32, i32) {
    %c0_i32 = arith.constant 0 : i32
    %c0_i32_0 = arith.constant 0 : i32
    %c0_i32_1 = arith.constant 0 : i32
    return %c0_i32, %c0_i32_0 : i32, i32
  }
  func.func @transform_4(%arg0: i32) -> (i32, i32) {
    %c0_i32 = arith.constant 0 : i32
    %c0_i32_0 = arith.constant 0 : i32
    %c0_i32_1 = arith.constant 0 : i32
    return %c0_i32, %c0_i32_0 : i32, i32
  }
  func.func @transform_5(%arg0: i32) -> (i32, i32) {
    %c0_i32 = arith.constant 0 : i32
    %c0_i32_0 = arith.constant 0 : i32
    %c0_i32_1 = arith.constant 0 : i32
    return %c0_i32, %c0_i32_0 : i32, i32
  }
  func.func @transform_6(%arg0: i32) -> (i32, i32) {
    %c0_i32 = arith.constant 0 : i32
    %c0_i32_0 = arith.constant 0 : i32
    %c0_i32_1 = arith.constant 0 : i32
    return %c0_i32, %c0_i32_0 : i32, i32
  }
  func.func @transform_7(%arg0: i32) -> (i32, i32) {
    %c0_i32 = arith.constant 0 : i32
    %c0_i32_0 = arith.constant 0 : i32
    return %c0_i32, %arg0 : i32, i32
  }
}

</mosaic_0001>

<bundles_post_ra>
// kernel: tpu_custom_call.1
= control target key start
LH: loop header
LB: loop body
LE: loop exit
PB: predicated region body
PF: predicated region fallthrough
CT: control target
= control target key end

     0   :  { %s392_s0 = inlined_call_operand.vmem [shape: bf16[4,128], index: 0, kind: input, shape index: {}]   ;;  %s393_s1 = inlined_call_operand.vmem [shape: bf16[32,4], index: 1, kind: input, shape index: {}]   ;;  %s394_s2 = inlined_call_operand.vmem [shape: f32[32,1], index: 2, kind: input, shape index: {}]   ;;  %s395_s3 = inlined_call_operand.vmem [shape: bf16[32,32], index: 3, kind: input, shape index: {}]   ;;  %s396_s4 = inlined_call_operand.vmem [shape: f32[32,1], index: 4, kind: input, shape index: {}]   ;;  %s397_s5 = inlined_call_operand.vmem [shape: f32[32,1], index: 5, kind: input, shape index: {}]   ;;  %s398_s6 = inlined_call_operand.<no memory space> [shape: f32[1,1], index: 6, kind: input, shape index: {}]   ;;  %s399_s7 = inlined_call_operand.hbm [shape: f32[1,128], index: 7, kind: output, shape index: {}]  }
   0x1   :  { %v12_v0 = vstv %s398_s6 }
   0x2   :  { %13 = vst [vmem:[#allocation2] sm:$0x1] %v12_v0 }
   0x3   :  { %v37_v1 = vld [vmem:[%s394_s2 + $0x10] sm:$0xff]  ;;  %v35_v2 = vld [vmem:[%s394_s2] sm:$0xff]  ;;  %vm76_vm0 = vcmask 1041408   ;;  %v293_v4 = vmov 0   ;;  %v256_v6 = vld [vmem:[%s393_s1 + $0x8] sm:$0xff]  ;;  %vm69_vm1 = vcmask 31744  }
   0x4   :  { %v34_v3 = vld [vmem:[%s392_s0] sm:$0x3]  ;;  %265 = vset.pattern.permute.xlu1 %v293_v4  ;;  %264 = vset.pattern.permute.xlu0 %v293_v4 }
   0x5   :  { %v78_v5 = vsel %vm76_vm0, %v34_v3, 0  ;;  %51 = vperm.xlu0 %264, %v37_v1   ;;  %41 = vperm.xlu1 %265, %v35_v2   ;;  %v255_v7 = vld [vmem:[%s393_s1] sm:$0xff] }
   0x6   :  { %259 = vmatpush.bf16.msra.mxu3 %v78_v5  ;;  %87 = vmatpush.bf16.msra.mxu0 %v78_v5 }
   0x7   :  { %266 = vset.pattern.permute.xlu2 %v293_v4 }
   0x8   :  { %14 = vsyncpa [#allocation4], 0  ;;  %v38_v8 = vld [vmem:[%s394_s2 + $0x18] sm:$0xff]  ;;  %v36_v9 = vld [vmem:[%s394_s2 + $0x8] sm:$0xff]  ;;  %vm143_vm2 = vcmask 261120   ;;  %s226_s10 = sshll.u32 %s399_s7, 4  ;;  %s227_s10 = int_to_ptr.hbm [resolvable:$true] %s226_s10 }
   0x9   :  { %244 = vmatmul.msk.bf16.vlgmr.msra.gmra.mxu3 %vm69_vm1, %v256_v6  ;;  %243 = vmatmul.msk.bf16.vlgmr.msra.gmra.mxu0 %vm69_vm1, %v255_v7  ;;  %v111_v10 = vld [vmem:[%s396_s4 + $0x10] sm:$0xff]  ;;  %v112_v11 = vld [vmem:[%s396_s4 + $0x18] sm:$0xff]  ;;  %v174_v12 = vld [vmem:[%s397_s5 + $0x8] sm:$0xff] }
   0xa   :  { %v175_v13 = vld [vmem:[%s397_s5 + $0x10] sm:$0xff]  ;;  %v210_v14 = vld [vmem:[#allocation2] sm:$0x1]  ;;  %v110_v17 = vld [vmem:[%s396_s4 + $0x8] sm:$0xff] }
   0xb   :  { %v109_v15 = vld [vmem:[%s396_s4] sm:$0xff]  ;;  %v176_v35 = vld [vmem:[%s397_s5 + $0x18] sm:$0xff]  ;;  %v258_v38 = vld [vmem:[%s395_s3 + $0x8] sm:$0xff] }
   0xc   :  { %115 = vperm.xlu2 %266, %v109_v15   ;;  %v173_v21 = vld [vmem:[%s397_s5] sm:$0xff] }
   0xd   :  { %56 = vperm.xlu0 %264, %v38_v8   ;;  %46 = vperm.xlu1 %265, %v36_v9   ;;  %v257_v37 = vld [vmem:[%s395_s3] sm:$0xff]  ;;  %s294_s3 = smov [#allocation3]  }
   0xe   :  { %s224_s5 = sshll.u32 %s294_s3, 4  ;;  %s225_s5 = int_to_ptr.vmem [resolvable:$true] %s224_s5 }
  0x14   :  { %120 = vperm.xlu2 %266, %v110_v17  }
  0x15   :  { %125 = vperm.xlu0 %264, %v111_v10   ;;  %130 = vperm.xlu1 %265, %v112_v11  }
  0x1c   :  { %179 = vperm.xlu2 %266, %v173_v21  }
  0x1d   :  { %184 = vperm.xlu0 %264, %v174_v12   ;;  %189 = vperm.xlu1 %265, %v175_v13  }
  0x24   :  { %194 = vperm.xlu2 %266, %v176_v35  }
  0x25   :  { %213 = vperm.xlu0 %264, %v210_v14  }
  0x66   :  { %v116_v39 = vpop.permute.xlu2 %115 }
  0x6e   :  { %v121_v40 = vpop.permute.xlu2 %120 }
  0x76   :  { %v180_v46 = vpop.permute.xlu2 %179 }
  0x77   :  { %v52_v18 = vpop.permute.xlu0 %51  ;;  %v42_v19 = vpop.permute.xlu1 %41 }
  0x7e   :  { %v195_v62 = vpop.permute.xlu2 %194 }
  0x7f   :  { %v57_v23 = vpop.permute.xlu0 %56  ;;  %v47_v25 = vpop.permute.xlu1 %46 }
  0x86   :  { %v89_v16 = vpop.f32.mrf.mxu0 }
  0x87   :  { %v90_v27 = vadd.f32 %v89_v16, %v42_v19  ;;  %v126_v42 = vpop.permute.xlu0 %125  ;;  %v131_v44 = vpop.permute.xlu1 %130 }
  0x89   :  { %v99_v32 = vmax.f32 %v90_v27, 0.0 }
  0x8c   :  { %v94_v20 = vpop.f32.mrf.mxu3 }
  0x8d   :  { %v95_v24 = vadd.f32 %v94_v20, %v52_v18 }
  0x8e   :  { %v91_v22 = vpop.f32.mrf.mxu0 }
  0x8f   :  { %v92_v28 = vadd.f32 %v91_v22, %v47_v25  ;;  %v101_v30 = vmax.f32 %v95_v24, 0.0  ;;  %v185_v52 = vpop.permute.xlu0 %184  ;;  %v190_v59 = vpop.permute.xlu1 %189 }
  0x91   :  { %v100_v33 = vmax.f32 %v92_v28, 0.0 }
  0x93   :  { %v107_v36 = vpack.c.bf16 %v100_v33, %v99_v32 }
  0x94   :  { %v96_v26 = vpop.f32.mrf.mxu3 }
  0x95   :  { %v97_v29 = vadd.f32 %v96_v26, %v57_v23 }
  0x97   :  { %v102_v31 = vmax.f32 %v97_v29, 0.0  ;;  %v214_v6 = vpop.permute.xlu0 %213 }
  0x98   :  { %v216_v8 = vperm.slane %v214_v6, 0 }
  0x99   :  { %v108_v34 = vpack.c.bf16 %v102_v31, %v101_v30 }
  0x9b   :  { %156 = vmatpush.bf16.msra.mxu1 %v108_v34  ;;  %260 = vmatpush.bf16.msra.mxu2 %v108_v34 }
  0x9f   :  { %157 = vmatpush.bf16.msra.mxu1 %v107_v36  ;;  %261 = vmatpush.bf16.msra.mxu2 %v107_v36 }
  0xa2   :  { %253 = vmatmul.msk.bf16.vlgmr.msra.gmra.mxu1 %vm143_vm2, %v257_v37  ;;  %254 = vmatmul.msk.bf16.vlgmr.msra.gmra.mxu2 %vm143_vm2, %v258_v38 }
 0x11f   :  { %v159_v41 = vpop.f32.mrf.mxu1 }
 0x120   :  { %v160_v43 = vadd.f32 %v159_v41, %v116_v39 }
 0x122   :  { %v169_v48 = vmax.f32 %v160_v43, 0.0 }
 0x124   :  { %v197_v53 = vmul.f32 %v180_v46, %v169_v48 }
 0x125   :  { %v164_v45 = vpop.f32.mrf.mxu2 }
 0x126   :  { %v165_v49 = vadd.f32 %v164_v45, %v126_v42 }
 0x127   :  { %v161_v47 = vpop.f32.mrf.mxu1 }
 0x128   :  { %v162_v50 = vadd.f32 %v161_v47, %v121_v40  ;;  %v171_v54 = vmax.f32 %v165_v49, 0.0 }
 0x12a   :  { %v170_v51 = vmax.f32 %v162_v50, 0.0  ;;  %v199_v60 = vmul.f32 %v190_v59, %v171_v54 }
 0x12c   :  { %v198_v55 = vmul.f32 %v185_v52, %v170_v51 }
 0x12d   :  { %v166_v56 = vpop.f32.mrf.mxu2 }
 0x12e   :  { %v201_v57 = vadd.f32 %v198_v55, %v197_v53  ;;  %v167_v58 = vadd.f32 %v166_v56, %v131_v44 }
 0x130   :  { %v172_v61 = vmax.f32 %v167_v58, 0.0  ;;  %v202_v0 = vadd.f32 %v201_v57, %v199_v60 }
 0x132   :  { %v200_v63 = vmul.f32 %v195_v62, %v172_v61 }
 0x134   :  { %v203_v1 = vadd.f32 %v202_v0, %v200_v63 }
 0x136   :  { %v204_v2 = vrot.slane %v203_v1, 4 }
 0x138   :  { %v205_v3 = vadd.f32 %v204_v2, %v203_v1 }
 0x13a   :  { %v206_v4 = vrot.slane %v205_v3, 2 }
 0x13c   :  { %v207_v5 = vadd.f32 %v206_v4, %v205_v3 }
 0x13e   :  { %v208_v7 = vrot.slane %v207_v5, 1 }
 0x140   :  { %v209_v9 = vadd.f32 %v208_v7, %v207_v5 }
 0x142   :  { %v217_v10 = vadd.f32 %v216_v8, %v209_v9 }
 0x144   :  { %218 = vst [vmem:[#allocation3] sm:$0x1] %v217_v10 }
 0x145   :  { %229 = dma.vmem_to_hbm [thread:$0]  %s225_s5, 16, %s227_s10, [#allocation4]  }
 0x146   :  { %291 = dma.done.wait [#allocation4], 16  }
 0x147   :  { %292 = vsyncadd [#allocation4], 4294967280 }
 0x148   :  { %234 = vsyncpa [#allocation4], 1 }

</bundles_post_ra>
